<compile_context>
chip_gen: v6e
topology: v6e:2x2x1
jax: 0.10.0
libtpu: 0.0.40
codegen_flags: <defaults>
</compile_context>

<pallas_src>
import functools
import numpy as np
import jax
import jax.numpy as jnp
from jax.experimental import pallas as pl
from jax.experimental.pallas import tpu as pltpu


def _round_up(a, b):
    return (a + b - 1) // b * b


def _vmem_capacity_bytes():
    """Physical VMEM of the local chip (64 MiB on v7x, 128 MiB on v5e/v6e)."""
    try:
        return int(pltpu.get_tpu_info().vmem_capacity_bytes)
    except Exception:
        return 64 * 1024 * 1024          # conservative (v7x) fallback


def _vmem_footprint(br, bk, D):
    """Rough per-step VMEM bytes: double-buffered pipeline tiles + temporaries."""
    x_tile = 2 * br * D * 4              # f32 x, 2 pipeline buffers
    w1_tile = 2 * D * bk * 2             # bf16 W1
    w2_tile = 2 * bk * D * 2             # bf16 W2
    out_tile = 2 * br * D * 4            # f32 out (doubles as accumulator)
    xb_scratch = br * D * 2              # bf16 x scratch
    h_tmp = br * bk * 6                  # f32 h + bf16 cast temporaries
    small = 2 * (bk + 4 * D) * 4         # b1 / b2 / ln params
    return x_tile + w1_tile + w2_tile + out_tile + xb_scratch + h_tmp + small


# --------------------------------------------------------------------------
# Fused FFN kernel.
#   grid = (row_tiles, dff_tiles); dff is the reduction axis (last).
#   fc2 partials accumulate directly into the k-resident f32 output block.
# --------------------------------------------------------------------------
def _ffn_kernel(x_ref, w1_ref, b1_ref, w2_ref, b2_ref, lnw_ref, lnb_ref,
                out_ref, xb_ref):
    k = pl.program_id(1)
    nk = pl.num_programs(1)

    # Hoist the f32 -> bf16 cast of the (k-resident) x tile out of the k loop.
    @pl.when(k == 0)
    def _cast_x():
        xb_ref[...] = x_ref[...].astype(jnp.bfloat16)

    # fc1 (this d_ff tile) + bias + relu, f32 accumulation on the MXU.
    h = jnp.dot(xb_ref[...], w1_ref[...], preferred_element_type=jnp.float32)
    h = jnp.maximum(h + b1_ref[...], 0.0)                    # [br, bk] f32

    # fc2 partial contraction over this d_ff tile.
    part = jnp.dot(h.astype(jnp.bfloat16), w2_ref[...],
                   preferred_element_type=jnp.float32)       # [br, D] f32

    @pl.when(k == 0)
    def _first():
        out_ref[...] = part

    @pl.when(k > 0)
    def _accum():
        out_ref[...] += part

    @pl.when(k == nk - 1)
    def _finalize():
        y = out_ref[...] + b2_ref[...] + x_ref[...]          # residual, f32
        # fused single-pass mean / sum-of-squares LayerNorm (f32)
        mu = jnp.mean(y, axis=-1, keepdims=True)
        ms = jnp.mean(y * y, axis=-1, keepdims=True)
        var = ms - mu * mu
        z = (y - mu) * jax.lax.rsqrt(var + 1e-5)
        out_ref[...] = (z * lnw_ref[...] + lnb_ref[...]).astype(out_ref.dtype)


def ffn_pallas(x, w1, b1, w2, b2, ln_w, ln_b, *, block_rows=512, block_ff=None):
    """x: [B, L, D] f32.  w1: [D, dff], w2: [dff, D] (pre-transposed, x @ W).
    Weights may be passed pre-cast to bf16 (recommended)."""
    B, L, D = x.shape
    dff = w1.shape[1]
    rows = B * L

    x2 = x.reshape(rows, D).astype(jnp.float32)

    cap = _vmem_capacity_bytes()
    budget = int(cap * 0.7)

    # Row tiling: sublane-aligned (multiple of 8).
    br = min(block_rows, _round_up(rows, 8))
    # v7x megacore: with enough work, keep >= 2 tiles on the parallel axis.
    if rows >= 1024 and _round_up(rows, br) // br < 2:
        br = _round_up(pl.cdiv(rows, 2), 8)

    # d_ff reduction tiling: prefer bk = dff (weights fully resident, DMA'd
    # once per call); otherwise 128-aligned halvings; last resort smaller br.
    cands = [dff]
    c = dff
    while c % 2 == 0 and (c // 2) % 128 == 0:
        c //= 2
        cands.append(c)
    if block_ff is not None:
        cands = [k for k in cands if k <= block_ff] or cands[-1:]
    bk = next((k for k in cands if _vmem_footprint(br, k, D) <= budget),
              cands[-1])
    while _vmem_footprint(br, bk, D) > budget and br > 64:
        br = max(64, _round_up(br // 2, 8))

    padded_rows = _round_up(rows, br)
    if padded_rows != rows:
        x2 = jnp.pad(x2, ((0, padded_rows - rows), (0, 0)))
    grid = (padded_rows // br, dff // bk)

    vmem_limit = int(min(int(cap * 0.85),
                         max(_vmem_footprint(br, bk, D) + (8 << 20), 32 << 20)))

    cost = pl.CostEstimate(
        flops=4 * rows * D * dff,                        # two matmuls
        transcendentals=rows,                            # rsqrt per row
        bytes_accessed=(rows * D * 4 * 2                 # x in + out
                        + 2 * D * dff * 2                # one pass of W1+W2
                        + (dff + 3 * D) * 4))            # biases / LN params

    out = pl.pallas_call(
        _ffn_kernel,
        out_shape=jax.ShapeDtypeStruct((padded_rows, D), jnp.float32),
        grid_spec=pltpu.PrefetchScalarGridSpec(
            num_scalar_prefetch=0,
            grid=grid,
            in_specs=[
                pl.BlockSpec((br, D), lambda i, k: (i, 0)),   # x (k-resident)
                pl.BlockSpec((D, bk), lambda i, k: (0, k)),   # W1 tile
                pl.BlockSpec((1, bk), lambda i, k: (0, k)),   # b1 tile
                pl.BlockSpec((bk, D), lambda i, k: (k, 0)),   # W2 tile
                pl.BlockSpec((1, D), lambda i, k: (0, 0)),    # b2
                pl.BlockSpec((1, D), lambda i, k: (0, 0)),    # ln weight
                pl.BlockSpec((1, D), lambda i, k: (0, 0)),    # ln bias
            ],
            out_specs=pl.BlockSpec((br, D), lambda i, k: (i, 0)),
            scratch_shapes=[pltpu.VMEM((br, D), jnp.bfloat16)],  # x in bf16
        ),
        compiler_params=pltpu.CompilerParams(
            dimension_semantics=("parallel", "arbitrary"),
            vmem_limit_bytes=vmem_limit),
        cost_estimate=cost,
    )(x2,
      w1.astype(jnp.bfloat16),
      b1.reshape(1, dff).astype(jnp.float32),
      w2.astype(jnp.bfloat16),
      b2.reshape(1, D).astype(jnp.float32),
      ln_w.reshape(1, D).astype(jnp.float32),
      ln_b.reshape(1, D).astype(jnp.float32))

    return out[:rows].reshape(B, L, D)


# --------------------------------------------------------------------------
# Pure-JAX reference (same bf16-operand / f32-accumulate math).
# --------------------------------------------------------------------------
def _ffn_ref(x, w1, b1, w2, b2, ln_w, ln_b):
    xb = x.astype(jnp.bfloat16)
    h = jnp.dot(xb, w1.astype(jnp.bfloat16),
                preferred_element_type=jnp.float32) + b1
    h = jnp.maximum(h, 0.0)
    o = jnp.dot(h.astype(jnp.bfloat16), w2.astype(jnp.bfloat16),
                preferred_element_type=jnp.float32) + b2
    y = o + x
    mu = y.mean(-1, keepdims=True)
    var = ((y - mu) ** 2).mean(-1, keepdims=True)
    return (y - mu) / jnp.sqrt(var + 1e-5) * ln_w + ln_b


# --------------------------------------------------------------------------
if __name__ == "__main__":
    # Small shapes consistent with the module (d_model on the 128-lane axis).
    B, L = 2, 8
    d_model, d_ff = 128, 512

    key = jax.random.PRNGKey(0)
    ks = jax.random.split(key, 8)

    # nn.Linear-style params, stored pre-transposed ([in, out]) for x @ W.
    s1 = 1.0 / np.sqrt(d_model)
    s2 = 1.0 / np.sqrt(d_ff)
    w1 = jax.random.uniform(ks[0], (d_model, d_ff), minval=-s1, maxval=s1
                            ).astype(jnp.float32)
    b1 = jax.random.uniform(ks[1], (d_ff,), minval=-s1, maxval=s1
                            ).astype(jnp.float32)
    w2 = jax.random.uniform(ks[2], (d_ff, d_model), minval=-s2, maxval=s2
                            ).astype(jnp.float32)
    b2 = jax.random.uniform(ks[3], (d_model,), minval=-s2, maxval=s2
                            ).astype(jnp.float32)
    ln_w = jnp.ones((d_model,), jnp.float32)
    ln_b = jnp.zeros((d_model,), jnp.float32)

    x = jax.random.normal(ks[4], (B, L, d_model), jnp.float32)

    # Pre-cast the weights to bf16 once, outside the jitted forward.
    w1_bf = jax.device_put(w1.astype(jnp.bfloat16))
    w2_bf = jax.device_put(w2.astype(jnp.bfloat16))

    fwd = jax.jit(functools.partial(ffn_pallas, block_rows=512))
    out = fwd(x, w1_bf, b1, w2_bf, b2, ln_w, ln_b)
    jax.block_until_ready(out)

    ref = _ffn_ref(x, w1, b1, w2, b2, ln_w, ln_b)
    assert out.shape == (B, L, d_model)
    err = float(np.max(np.abs(np.asarray(out) - np.asarray(ref))))
    assert np.allclose(np.asarray(out), np.asarray(ref),
                       atol=2e-3, rtol=2e-3), err

    print("KERNEL_OK")
</pallas_src>

<mosaic_0001>
module attributes {stable_mosaic.version = 11 : i64} {
  func.func @_ffn_kernel(%arg0: i32, %arg1: i32, %arg2: memref<16x128xf32, #tpu.memory_space<vmem>>, %arg3: memref<128x512xbf16, #tpu.memory_space<vmem>>, %arg4: memref<1x512xf32, #tpu.memory_space<vmem>>, %arg5: memref<512x128xbf16, #tpu.memory_space<vmem>>, %arg6: memref<1x128xf32, #tpu.memory_space<vmem>>, %arg7: memref<1x128xf32, #tpu.memory_space<vmem>>, %arg8: memref<1x128xf32, #tpu.memory_space<vmem>>, %arg9: memref<16x128xf32, #tpu.memory_space<vmem>>, %arg10: memref<16x128xbf16, #tpu.memory_space<vmem>>) attributes {dimension_semantics = [#tpu.dimension_semantics<parallel>, #tpu.dimension_semantics<arbitrary>], iteration_bounds = array<i64: 1, 1>, scalar_prefetch = 0 : i64, scratch_operands = 1 : i64, tpu.core_type = #tpu.core_type<tc>, window_params = [{transform_indices = @transform_0, window_bounds = array<i64: 16, 128>}, {transform_indices = @transform_1, window_bounds = array<i64: 128, 512>}, {transform_indices = @transform_2, window_bounds = array<i64: 1, 512>}, {transform_indices = @transform_3, window_bounds = array<i64: 512, 128>}, {pipeline_mode = #tpu.pipeline_mode<synchronous>, transform_indices = @transform_4, window_bounds = array<i64: 1, 128>}, {pipeline_mode = #tpu.pipeline_mode<synchronous>, transform_indices = @transform_5, window_bounds = array<i64: 1, 128>}, {pipeline_mode = #tpu.pipeline_mode<synchronous>, transform_indices = @transform_6, window_bounds = array<i64: 1, 128>}, {transform_indices = @transform_7, window_bounds = array<i64: 16, 128>}]} {
    %c0_i32 = arith.constant 0 : i32
    %0 = arith.cmpi eq, %arg1, %c0_i32 : i32
    %1 = arith.extui %0 : i1 to i32
    %c0_i32_0 = arith.constant 0 : i32
    %2 = arith.cmpi ne, %1, %c0_i32_0 : i32
    scf.if %2 {
      %c0_16 = arith.constant 0 : index
      %c0_17 = arith.constant 0 : index
      %23 = vector.load %arg2[%c0_16, %c0_17] : memref<16x128xf32, #tpu.memory_space<vmem>>, vector<16x128xf32>
      %24 = arith.truncf %23 : vector<16x128xf32> to vector<16x128xbf16>
      %c0_18 = arith.constant 0 : index
      %c0_19 = arith.constant 0 : index
      %25 = vector.load %arg10[%c0_18, %c0_19] : memref<16x128xbf16, #tpu.memory_space<vmem>>, vector<16x128xbf16>
      tpu.vector_store %arg10[%c0_18, %c0_19], %24 {strides = array<i32>} : memref<16x128xbf16, #tpu.memory_space<vmem>>, vector<16x128xbf16>,
    } else {
    }
    %c0 = arith.constant 0 : index
    %c0_1 = arith.constant 0 : index
    %3 = vector.load %arg10[%c0, %c0_1] : memref<16x128xbf16, #tpu.memory_space<vmem>>, vector<16x128xbf16>
    %c0_2 = arith.constant 0 : index
    %c0_3 = arith.constant 0 : index
    %4 = vector.load %arg3[%c0_2, %c0_3] : memref<128x512xbf16, #tpu.memory_space<vmem>>, vector<128x512xbf16>
    %cst = arith.constant dense<0.000000e+00> : vector<16x512xf32>
    %5 = tpu.matmul %3, %4, %cst {dimension_numbers = #tpu.dot_dimension_numbers<[1], [0], [0], [1], [0, 0, 1, 1], [], []>} : vector<16x128xbf16>, vector<128x512xbf16>, vector<16x512xf32> -> vector<16x512xf32>
    %c0_4 = arith.constant 0 : index
    %c0_5 = arith.constant 0 : index
    %6 = vector.load %arg4[%c0_4, %c0_5] : memref<1x512xf32, #tpu.memory_space<vmem>>, vector<1x512xf32>
    %7 = vector.broadcast %6 : vector<1x512xf32> to vector<16x512xf32>
    %8 = arith.addf %5, %7 : vector<16x512xf32>
    %cst_6 = arith.constant 0.000000e+00 : f32
    %9 = vector.broadcast %cst_6 : f32 to vector<16x512xf32>
    %10 = arith.maximumf %8, %9 : vector<16x512xf32>
    %11 = arith.truncf %10 : vector<16x512xf32> to vector<16x512xbf16>
    %c0_7 = arith.constant 0 : index
    %c0_8 = arith.constant 0 : index
    %12 = vector.load %arg5[%c0_7, %c0_8] : memref<512x128xbf16, #tpu.memory_space<vmem>>, vector<512x128xbf16>
    %cst_9 = arith.constant dense<0.000000e+00> : vector<16x128xf32>
    %13 = tpu.matmul %11, %12, %cst_9 {dimension_numbers = #tpu.dot_dimension_numbers<[1], [0], [0], [1], [0, 0, 1, 1], [], []>} : vector<16x512xbf16>, vector<512x128xbf16>, vector<16x128xf32> -> vector<16x128xf32>
    %c0_i32_10 = arith.constant 0 : i32
    %14 = arith.cmpi eq, %arg1, %c0_i32_10 : i32
    %15 = arith.extui %14 : i1 to i32
    %c0_i32_11 = arith.constant 0 : i32
    %16 = arith.cmpi ne, %15, %c0_i32_11 : i32
    scf.if %16 {
      %c0_16 = arith.constant 0 : index
      %c0_17 = arith.constant 0 : index
      %23 = vector.load %arg9[%c0_16, %c0_17] : memref<16x128xf32, #tpu.memory_space<vmem>>, vector<16x128xf32>
      tpu.vector_store %arg9[%c0_16, %c0_17], %13 {strides = array<i32>} : memref<16x128xf32, #tpu.memory_space<vmem>>, vector<16x128xf32>,
    } else {
    }
    %c0_i32_12 = arith.constant 0 : i32
    %17 = arith.cmpi sgt, %arg1, %c0_i32_12 : i32
    %18 = arith.extui %17 : i1 to i32
    %c0_i32_13 = arith.constant 0 : i32
    %19 = arith.cmpi ne, %18, %c0_i32_13 : i32
    scf.if %19 {
      %c0_16 = arith.constant 0 : index
      %c0_17 = arith.constant 0 : index
      %23 = vector.load %arg9[%c0_16, %c0_17] : memref<16x128xf32, #tpu.memory_space<vmem>>, vector<16x128xf32>
      %24 = arith.addf %23, %13 : vector<16x128xf32>
      %c0_18 = arith.constant 0 : index
      %c0_19 = arith.constant 0 : index
      %25 = vector.load %arg9[%c0_18, %c0_19] : memref<16x128xf32, #tpu.memory_space<vmem>>, vector<16x128xf32>
      tpu.vector_store %arg9[%c0_18, %c0_19], %24 {strides = array<i32>} : memref<16x128xf32, #tpu.memory_space<vmem>>, vector<16x128xf32>,
    } else {
    }
    %c0_i32_14 = arith.constant 0 : i32
    %20 = arith.cmpi eq, %arg1, %c0_i32_14 : i32
    %21 = arith.extui %20 : i1 to i32
    %c0_i32_15 = arith.constant 0 : i32
    %22 = arith.cmpi ne, %21, %c0_i32_15 : i32
    scf.if %22 {
      %c0_16 = arith.constant 0 : index
      %c0_17 = arith.constant 0 : index
      %23 = vector.load %arg9[%c0_16, %c0_17] : memref<16x128xf32, #tpu.memory_space<vmem>>, vector<16x128xf32>
      %c0_18 = arith.constant 0 : index
      %c0_19 = arith.constant 0 : index
      %24 = vector.load %arg6[%c0_18, %c0_19] : memref<1x128xf32, #tpu.memory_space<vmem>>, vector<1x128xf32>
      %25 = vector.broadcast %24 : vector<1x128xf32> to vector<16x128xf32>
      %26 = arith.addf %23, %25 : vector<16x128xf32>
      %c0_20 = arith.constant 0 : index
      %c0_21 = arith.constant 0 : index
      %27 = vector.load %arg2[%c0_20, %c0_21] : memref<16x128xf32, #tpu.memory_space<vmem>>, vector<16x128xf32>
      %28 = arith.addf %26, %27 : vector<16x128xf32>
      %cst_22 = arith.constant dense<0.000000e+00> : vector<16xf32>
      %29 = vector.multi_reduction <add>, %28, %cst_22 [1] : vector<16x128xf32> to vector<16xf32>
      %30 = vector.shape_cast %29 : vector<16xf32> to vector<16x1xf32>
      %cst_23 = arith.constant 1.280000e+02 : f32
      %31 = vector.broadcast %cst_23 : f32 to vector<16x1xf32>
      %32 = arith.divf %30, %31 : vector<16x1xf32>
      %33 = arith.mulf %28, %28 : vector<16x128xf32>
      %cst_24 = arith.constant dense<0.000000e+00> : vector<16xf32>
      %34 = vector.multi_reduction <add>, %33, %cst_24 [1] : vector<16x128xf32> to vector<16xf32>
      %35 = vector.shape_cast %34 : vector<16xf32> to vector<16x1xf32>
      %cst_25 = arith.constant 1.280000e+02 : f32
      %36 = vector.broadcast %cst_25 : f32 to vector<16x1xf32>
      %37 = arith.divf %35, %36 : vector<16x1xf32>
      %38 = arith.mulf %32, %32 : vector<16x1xf32>
      %39 = arith.subf %37, %38 : vector<16x1xf32>
      %40 = vector.broadcast %32 : vector<16x1xf32> to vector<16x128xf32>
      %41 = arith.subf %28, %40 : vector<16x128xf32>
      %cst_26 = arith.constant 9.99999974E-6 : f32
      %42 = vector.broadcast %cst_26 : f32 to vector<16x1xf32>
      %43 = arith.addf %39, %42 : vector<16x1xf32>
      %44 = math.rsqrt %43 : vector<16x1xf32>
      %45 = vector.broadcast %44 : vector<16x1xf32> to vector<16x128xf32>
      %46 = arith.mulf %41, %45 : vector<16x128xf32>
      %c0_27 = arith.constant 0 : index
      %c0_28 = arith.constant 0 : index
      %47 = vector.load %arg7[%c0_27, %c0_28] : memref<1x128xf32, #tpu.memory_space<vmem>>, vector<1x128xf32>
      %48 = vector.broadcast %47 : vector<1x128xf32> to vector<16x128xf32>
      %49 = arith.mulf %46, %48 : vector<16x128xf32>
      %c0_29 = arith.constant 0 : index
      %c0_30 = arith.constant 0 : index
      %50 = vector.load %arg8[%c0_29, %c0_30] : memref<1x128xf32, #tpu.memory_space<vmem>>, vector<1x128xf32>
      %51 = vector.broadcast %50 : vector<1x128xf32> to vector<16x128xf32>
      %52 = arith.addf %49, %51 : vector<16x128xf32>
      %c0_31 = arith.constant 0 : index
      %c0_32 = arith.constant 0 : index
      %53 = vector.load %arg9[%c0_31, %c0_32] : memref<16x128xf32, #tpu.memory_space<vmem>>, vector<16x128xf32>
      tpu.vector_store %arg9[%c0_31, %c0_32], %52 {strides = array<i32>} : memref<16x128xf32, #tpu.memory_space<vmem>>, vector<16x128xf32>,
    } else {
    }
    return
  }
  func.func @transform_0(%arg0: i32, %arg1: i32) -> (i32, i32) {
    %c0_i32 = arith.constant 0 : i32
    %c0_i32_0 = arith.constant 0 : i32
    return %arg0, %c0_i32 : i32, i32
  }
  func.func @transform_1(%arg0: i32, %arg1: i32) -> (i32, i32) {
    %c0_i32 = arith.constant 0 : i32
    %c0_i32_0 = arith.constant 0 : i32
    return %c0_i32, %arg1 : i32, i32
  }
  func.func @transform_2(%arg0: i32, %arg1: i32) -> (i32, i32) {
    %c0_i32 = arith.constant 0 : i32
    %c0_i32_0 = arith.constant 0 : i32
    return %c0_i32, %arg1 : i32, i32
  }
  func.func @transform_3(%arg0: i32, %arg1: i32) -> (i32, i32) {
    %c0_i32 = arith.constant 0 : i32
    %c0_i32_0 = arith.constant 0 : i32
    return %arg1, %c0_i32 : i32, i32
  }
  func.func @transform_4(%arg0: i32, %arg1: i32) -> (i32, i32) {
    %c0_i32 = arith.constant 0 : i32
    %c0_i32_0 = arith.constant 0 : i32
    %c0_i32_1 = arith.constant 0 : i32
    return %c0_i32, %c0_i32_0 : i32, i32
  }
  func.func @transform_5(%arg0: i32, %arg1: i32) -> (i32, i32) {
    %c0_i32 = arith.constant 0 : i32
    %c0_i32_0 = arith.constant 0 : i32
    %c0_i32_1 = arith.constant 0 : i32
    return %c0_i32, %c0_i32_0 : i32, i32
  }
  func.func @transform_6(%arg0: i32, %arg1: i32) -> (i32, i32) {
    %c0_i32 = arith.constant 0 : i32
    %c0_i32_0 = arith.constant 0 : i32
    %c0_i32_1 = arith.constant 0 : i32
    return %c0_i32, %c0_i32_0 : i32, i32
  }
  func.func @transform_7(%arg0: i32, %arg1: i32) -> (i32, i32) {
    %c0_i32 = arith.constant 0 : i32
    %c0_i32_0 = arith.constant 0 : i32
    return %arg0, %c0_i32 : i32, i32
  }
}

</mosaic_0001>

<bundles_post_ra>
// kernel: ffn_pallas.1
= control target key start
LH: loop header
LB: loop body
LE: loop exit
PB: predicated region body
PF: predicated region fallthrough
CT: control target
= control target key end

     0   :  { %12 = vsyncpa [#allocation4], 0  ;;  %s1233_s0 = inlined_call_operand.hbm [shape: f32[16,128], index: 0, kind: input, shape index: {}]   ;;  %s1234_s1 = inlined_call_operand.hbm [shape: bf16[128,512], index: 1, kind: input, shape index: {}]   ;;  %s1235_s2 = inlined_call_operand.vmem [shape: f32[1,512], index: 2, kind: input, shape index: {}]   ;;  %s1236_s3 = inlined_call_operand.hbm [shape: bf16[512,128], index: 3, kind: input, shape index: {}]   ;;  %s1237_s4 = inlined_call_operand.vmem [shape: f32[1,128], index: 4, kind: input, shape index: {}]   ;;  %s1238_s5 = inlined_call_operand.vmem [shape: f32[1,128], index: 5, kind: input, shape index: {}]   ;;  %s1239_s6 = inlined_call_operand.vmem [shape: f32[1,128], index: 6, kind: input, shape index: {}]   ;;  %s1240_s7 = inlined_call_operand.hbm [shape: f32[16,128], index: 7, kind: output, shape index: {}]  }
   0x1   :  { %13 = vsyncpa [#allocation7], 0 }
   0x2   :  { %14 = vsyncpa [#allocation5], 0  ;;  %s1144_s24 = smov [#allocation6]  }
   0x3   :  { %s32_s25 = sshll.u32 %s1144_s24, 4  ;;  %s33_s25 = int_to_ptr.vmem [resolvable:$true] %s32_s25 }
   0x4   :  { %s1066_s26 = scalar_lea.vmem %s33_s25, 4096  ;;  %p1071_p1 = scmp.lt.s32.totalorder %s33_s25, %s33_s25 }
   0x5   :  { %p1067_p0 = scmp.ne.s32.totalorder %s33_s25, %s1066_s26  ;;  %p1072_p2 = scmp.lt.s32.totalorder %s1066_s26, %s1066_s26 }
   0x7   :  { %p1073_p3 = por %p1072_p2, %p1071_p1 }
   0x9   :  { %p1074_p4 = pnand %p1073_p3, %p1067_p0 }
   0xb   :  { %1077 = shalt.err (!%p1074_p4)
}
   0xc   :  { %s1145_s27 = smov 256   ;;  %s1146_s28 = smov 16  }
   0xd   :  { %38 = dma.hbm_to_vmem [thread:$0]  %s1234_s1, 4096, %s33_s25, [#allocation7], %s1145_s27, %s1145_s27, %s1146_s28  }
   0xe   :  { %s1147_s8 = smov [#allocation3]  }
   0xf   :  { %s20_s9 = sshll.u32 %s1147_s8, 4  ;;  %s21_s9 = int_to_ptr.vmem [resolvable:$true] %s20_s9 }
  0x10   :  { %s1086_s10 = scalar_lea.vmem %s21_s9, 256  ;;  %p1091_p6 = scmp.lt.s32.totalorder %s21_s9, %s21_s9 }
  0x11   :  { %p1087_p5 = scmp.ne.s32.totalorder %s21_s9, %s1086_s10  ;;  %p1092_p7 = scmp.lt.s32.totalorder %s1086_s10, %s1086_s10 }
  0x13   :  { %p1093_p8 = por %p1092_p7, %p1091_p6 }
  0x15   :  { %p1094_p9 = pnand %p1093_p8, %p1087_p5 }
  0x17   :  { %1097 = shalt.err (!%p1094_p9)
}
  0x18   :  { %s1148_s11 = smov 128   ;;  %s1149_s12 = smov 8  }
  0x19   :  { %26 = dma.hbm_to_vmem [thread:$0]  %s1233_s0, 256, %s21_s9, [#allocation4], %s1148_s11, %s1148_s11, %s1149_s12  }
  0x1a   :  { %s1150_s1 = smov [#allocation8]  }
  0x1b   :  { %s46_s15 = sshll.u32 %s1150_s1, 4  ;;  %s47_s15 = int_to_ptr.vmem [resolvable:$true] %s46_s15 }
  0x1c   :  { %s1106_s16 = scalar_lea.vmem %s47_s15, 4096  ;;  %p1111_p11 = scmp.lt.s32.totalorder %s47_s15, %s47_s15 }
  0x1d   :  { %p1107_p10 = scmp.ne.s32.totalorder %s47_s15, %s1106_s16  ;;  %p1112_p12 = scmp.lt.s32.totalorder %s1106_s16, %s1106_s16 }
  0x1f   :  { %p1113_p13 = por %p1112_p12, %p1111_p11 }
  0x21   :  { %p1114_p0 = pnand %p1113_p13, %p1107_p10 }
  0x23   :  { %1117 = shalt.err (!%p1114_p0)
}
  0x24   :  { %s1151_s17 = smov 64   ;;  %s1152_s18 = smov 4  }
  0x25   :  { %52 = dma.hbm_to_vmem [thread:$0]  %s1236_s3, 4096, %s47_s15, [#allocation7], %s1151_s17, %s1151_s17, %s1152_s18  }
  0x26   :  { %1138 = dma.done.wait [#allocation4], 256  }
  0x27   :  { %1139 = vsyncadd [#allocation4], 4294967040 }
  0x28   :  { %1140 = dma.done.wait [#allocation7], 8192  }
  0x29   :  { %1141 = vsyncadd [#allocation7], 4294959104  ;;  %v1153_v0 = vmov 0   ;;  %v973_v1 = vld [vmem:[#allocation6 + $0xe4] ss:$16 sps:$4 sm:$0xff]   ;;  %v1209_v28 = vld [vmem:[#allocation3 + $0x8] sm:$0xff] }
  0x2a   :  { %339 = vmatprep.mubr.bf16.mxu0 %v1153_v0  ;;  %382 = vmatprep.mubr.bf16.mxu1 %v1153_v0  ;;  %v975_v2 = vld [vmem:[#allocation6 + $0xec] ss:$16 sps:$4 sm:$0xff]   ;;  %v977_v3 = vld [vmem:[#allocation6 + $0xe0] ss:$16 sps:$4 sm:$0xff]   ;;  %v978_v4 = vld [vmem:[#allocation6 + $0xe8] ss:$16 sps:$4 sm:$0xff]  }
  0x2b   :  { %307 = vmatprep.subr.bf16.mxu0 %v973_v1  ;;  %350 = vmatprep.subr.bf16.mxu1 %v975_v2  ;;  %v979_v5 = vld [vmem:[#allocation6 + $0xc4] ss:$16 sps:$4 sm:$0xff]   ;;  %v981_v6 = vld [vmem:[#allocation6 + $0xcc] ss:$16 sps:$4 sm:$0xff]   ;;  %v983_v7 = vld [vmem:[#allocation6 + $0xc0] ss:$16 sps:$4 sm:$0xff]  }
  0x2c   :  { %308 = vmatpush1.bf16.msra.mxu0 %v977_v3  ;;  %351 = vmatpush1.bf16.msra.mxu1 %v978_v4  ;;  %v984_v8 = vld [vmem:[#allocation6 + $0xc8] ss:$16 sps:$4 sm:$0xff]   ;;  %v985_v9 = vld [vmem:[#allocation6 + $0xa4] ss:$16 sps:$4 sm:$0xff]   ;;  %v987_v10 = vld [vmem:[#allocation6 + $0xac] ss:$16 sps:$4 sm:$0xff]  }
  0x2d   :  { %309 = vmatprep.subr.bf16.mxu0 %v979_v5  ;;  %352 = vmatprep.subr.bf16.mxu1 %v981_v6  ;;  %v989_v11 = vld [vmem:[#allocation6 + $0xa0] ss:$16 sps:$4 sm:$0xff]   ;;  %v990_v12 = vld [vmem:[#allocation6 + $0xa8] ss:$16 sps:$4 sm:$0xff]   ;;  %v991_v13 = vld [vmem:[#allocation6 + $0x84] ss:$16 sps:$4 sm:$0xff]   ;;  %v121_v5 = vlaneseq }
  0x2e   :  { %v993_v14 = vld [vmem:[#allocation6 + $0x8c] ss:$16 sps:$4 sm:$0xff]   ;;  %v995_v15 = vld [vmem:[#allocation6 + $0x80] ss:$16 sps:$4 sm:$0xff]   ;;  %v996_v16 = vld [vmem:[#allocation6 + $0x88] ss:$16 sps:$4 sm:$0xff]  }
  0x2f   :  { %v997_v17 = vld [vmem:[#allocation6 + $0x64] ss:$16 sps:$4 sm:$0xff]   ;;  %v999_v18 = vld [vmem:[#allocation6 + $0x6c] ss:$16 sps:$4 sm:$0xff]   ;;  %v1001_v19 = vld [vmem:[#allocation6 + $0x60] ss:$16 sps:$4 sm:$0xff]  }
  0x30   :  { %310 = vmatpush1.bf16.msra.mxu0 %v983_v7  ;;  %353 = vmatpush1.bf16.msra.mxu1 %v984_v8  ;;  %v1002_v20 = vld [vmem:[#allocation6 + $0x68] ss:$16 sps:$4 sm:$0xff]   ;;  %v1003_v21 = vld [vmem:[#allocation6 + $0x44] ss:$16 sps:$4 sm:$0xff]   ;;  %v1005_v22 = vld [vmem:[#allocation6 + $0x4c] ss:$16 sps:$4 sm:$0xff]  }
  0x31   :  { %311 = vmatprep.subr.bf16.mxu0 %v985_v9  ;;  %354 = vmatprep.subr.bf16.mxu1 %v987_v10  ;;  %v1007_v23 = vld [vmem:[#allocation6 + $0x40] ss:$16 sps:$4 sm:$0xff]   ;;  %v1008_v24 = vld [vmem:[#allocation6 + $0x48] ss:$16 sps:$4 sm:$0xff]   ;;  %v1009_v25 = vld [vmem:[#allocation6 + $0x24] ss:$16 sps:$4 sm:$0xff]  }
  0x32   :  { %v1011_v26 = vld [vmem:[#allocation6 + $0x2c] ss:$16 sps:$4 sm:$0xff]   ;;  %v1207_v27 = vld [vmem:[#allocation3] sm:$0xff]  ;;  %v1014_v31 = vld [vmem:[#allocation6 + $0x28] ss:$16 sps:$4 sm:$0xff]   ;;  %v122_v6 = vshrl.u32 %v121_v5, 7 }
  0x33   :  { %v1013_v29 = vld [vmem:[#allocation6 + $0x20] ss:$16 sps:$4 sm:$0xff]   ;;  %v916_v30 = vpack.c.bf16 %v1209_v28, %v1207_v27  ;;  %v1015_v32 = vld [vmem:[#allocation6 + $0x4] ss:$16 sps:$4 sm:$0xff]   ;;  %v1017_v33 = vld [vmem:[#allocation6 + $0xc] ss:$16 sps:$4 sm:$0xff]  }
  0x34   :  { %312 = vmatpush1.bf16.msra.mxu0 %v989_v11  ;;  %355 = vmatpush1.bf16.msra.mxu1 %v990_v12  ;;  %v1019_v34 = vld [vmem:[#allocation6] ss:$16 sps:$4 sm:$0xff]   ;;  %v1020_v35 = vld [vmem:[#allocation6 + $0x8] ss:$16 sps:$4 sm:$0xff]   ;;  %v127_v7 = vsub.s32 1, %v122_v6  ;;  %v135_v8 = vsub.s32 3, %v122_v6 }
  0x35   :  { %313 = vmatprep.subr.bf16.mxu0 %v991_v13  ;;  %356 = vmatprep.subr.bf16.mxu1 %v993_v14  ;;  %917 = vst [vmem:[#allocation2] sm:$0xff] %v916_v30   ;;  %v1022_v36 = vld [vmem:[#allocation8 + $0x78] sm:$0xff]   ;;  %v1026_v41 = vld [vmem:[#allocation8 + $0x70] sm:$0xff]   ;;  %v1030_v45 = vld [vmem:[#allocation8 + $0x68] sm:$0xff]   ;;  %v123_v9 = vsub.s32 0, %v122_v6  ;;  %v131_v10 = vsub.s32 2, %v122_v6 }
  0x36   :  { %v1023_v37 = vld [vmem:[#allocation8 + $0xf8] sm:$0xff]   ;;  %v1027_v42 = vld [vmem:[#allocation8 + $0xf0] sm:$0xff]   ;;  %v1031_v46 = vld [vmem:[#allocation8 + $0xe8] sm:$0xff]   ;;  %s1154_s25 = smov [#allocation9]  }
  0x37   :  { %v1024_v38 = vld [vmem:[#allocation8 + $0x38] sm:$0xff]   ;;  %v1028_v43 = vld [vmem:[#allocation8 + $0x30] sm:$0xff]   ;;  %v1032_v47 = vld [vmem:[#allocation8 + $0x28] sm:$0xff]   ;;  %s828_s26 = sshll.u32 %s1154_s25, 4  ;;  %s829_s26 = int_to_ptr.vmem [resolvable:$true] %s828_s26 }
  0x38   :  { %314 = vmatpush1.bf16.msra.mxu0 %v995_v15  ;;  %357 = vmatpush1.bf16.msra.mxu1 %v996_v16  ;;  %v1025_v39 = vld [vmem:[#allocation8 + $0xb8] sm:$0xff]   ;;  %v1029_v44 = vld [vmem:[#allocation8 + $0xb0] sm:$0xff]   ;;  %v1033_v48 = vld [vmem:[#allocation8 + $0xa8] sm:$0xff]   ;;  %s1118_s27 = scalar_lea.vmem %s829_s26, 256  ;;  %p1123_p2 = scmp.lt.s32.totalorder %s829_s26, %s829_s26 }
  0x39   :  { %315 = vmatprep.subr.bf16.mxu0 %v997_v17  ;;  %358 = vmatprep.subr.bf16.mxu1 %v999_v18  ;;  %v1034_v49 = vld [vmem:[#allocation8 + $0x60] sm:$0xff]   ;;  %v1038_v53 = vld [vmem:[#allocation8 + $0x58] sm:$0xff]   ;;  %v1042_v57 = vld [vmem:[#allocation8 + $0x50] sm:$0xff]   ;;  %p1119_p1 = scmp.ne.s32.totalorder %s829_s26, %s1118_s27  ;;  %p1124_p3 = scmp.lt.s32.totalorder %s1118_s27, %s1118_s27 }
  0x3a   :  { %v1035_v50 = vld [vmem:[#allocation8 + $0xe0] sm:$0xff]   ;;  %v1039_v54 = vld [vmem:[#allocation8 + $0xd8] sm:$0xff]   ;;  %v1043_v58 = vld [vmem:[#allocation8 + $0xd0] sm:$0xff]  }
  0x3b   :  { %v1036_v51 = vld [vmem:[#allocation8 + $0x20] sm:$0xff]   ;;  %v1040_v55 = vld [vmem:[#allocation8 + $0x18] sm:$0xff]   ;;  %v1044_v59 = vld [vmem:[#allocation8 + $0x10] sm:$0xff]   ;;  %p1125_p4 = por %p1124_p3, %p1123_p2 }
  0x3c   :  { %316 = vmatpush1.bf16.msra.mxu0 %v1001_v19  ;;  %359 = vmatpush1.bf16.msra.mxu1 %v1002_v20  ;;  %v1021_v40 = vld [vmem:[#allocation2] sm:$0xff]   ;;  %v1037_v52 = vld [vmem:[#allocation8 + $0xa0] sm:$0xff]   ;;  %v1041_v56 = vld [vmem:[#allocation8 + $0x98] sm:$0xff]  }
  0x3d   :  { %317 = vmatprep.subr.bf16.mxu0 %v1003_v21  ;;  %360 = vmatprep.subr.bf16.mxu1 %v1005_v22  ;;  %v1045_v60 = vld [vmem:[#allocation8 + $0x90] sm:$0xff]   ;;  %v1046_v61 = vld [vmem:[#allocation8 + $0x48] sm:$0xff]   ;;  %v1050_v1 = vld [vmem:[#allocation8 + $0x40] sm:$0xff]   ;;  %p1126_p5 = pnand %p1125_p4, %p1119_p1 }
  0x3e   :  { %v1047_v62 = vld [vmem:[#allocation8 + $0xc8] sm:$0xff]   ;;  %v1051_v2 = vld [vmem:[#allocation8 + $0xc0] sm:$0xff]  }
  0x3f   :  { %v1048_v63 = vld [vmem:[#allocation8 + $0x8] sm:$0xff]   ;;  %v1052_v3 = vld [vmem:[#allocation8] sm:$0xff]  }
  0x40   :  { %318 = vmatpush1.bf16.msra.mxu0 %v1007_v23  ;;  %361 = vmatpush1.bf16.msra.mxu1 %v1008_v24  ;;  %v1049_v0 = vld [vmem:[#allocation8 + $0x88] sm:$0xff]   ;;  %v1053_v4 = vld [vmem:[#allocation8 + $0x80] sm:$0xff]  }
  0x41   :  { %319 = vmatprep.subr.bf16.mxu0 %v1009_v25  ;;  %362 = vmatprep.subr.bf16.mxu1 %v1011_v26  ;;  %v119_v11 = vld [vmem:[%s1235_s2] sm:$0xf] }
  0x42   :  { %v128_v14 = vrot.slane %v119_v11, %v127_v7  ;;  %v136_v15 = vrot.slane %v119_v11, %v135_v8  ;;  %v124_v16 = vrot.slane %v119_v11, %v123_v9  ;;  %v132_v17 = vrot.slane %v119_v11, %v131_v10 }
  0x44   :  { %320 = vmatpush1.bf16.msra.mxu0 %v1013_v29  ;;  %363 = vmatpush1.bf16.msra.mxu1 %v1014_v31 }
  0x45   :  { %321 = vmatprep.subr.bf16.mxu0 %v1015_v32  ;;  %364 = vmatprep.subr.bf16.mxu1 %v1017_v33 }
  0x48   :  { %322 = vmatpush1.bf16.msra.mxu0 %v1019_v34  ;;  %365 = vmatpush1.bf16.msra.mxu1 %v1020_v35 }
  0x49   :  { %918 = vmatprep.subr.bf16.mxu0 %v1022_v36  ;;  %940 = vmatprep.subr.bf16.mxu1 %v1023_v37 }
  0x4b   :  { %340 = vmatmul.mubr.bf16.vlgmr.msra.gmra.mxu0 %v1021_v40  ;;  %383 = vmatmul.mubr.bf16.vlgmr.msra.gmra.mxu1 %v1021_v40 }
  0x4c   :  { %919 = vmatpush3.bf16.msra.mxu0 %v1024_v38  ;;  %941 = vmatpush3.bf16.msra.mxu1 %v1025_v39 }
  0x4d   :  { %920 = vmatprep.subr.bf16.mxu0 %v1026_v41  ;;  %942 = vmatprep.subr.bf16.mxu1 %v1027_v42 }
  0x50   :  { %921 = vmatpush3.bf16.msra.mxu0 %v1028_v43  ;;  %943 = vmatpush3.bf16.msra.mxu1 %v1029_v44 }
  0x51   :  { %922 = vmatprep.subr.bf16.mxu0 %v1030_v45  ;;  %944 = vmatprep.subr.bf16.mxu1 %v1031_v46 }
  0x54   :  { %923 = vmatpush3.bf16.msra.mxu0 %v1032_v47  ;;  %945 = vmatpush3.bf16.msra.mxu1 %v1033_v48 }
  0x55   :  { %924 = vmatprep.subr.bf16.mxu0 %v1034_v49  ;;  %946 = vmatprep.subr.bf16.mxu1 %v1035_v50 }
  0x58   :  { %925 = vmatpush3.bf16.msra.mxu0 %v1036_v51  ;;  %947 = vmatpush3.bf16.msra.mxu1 %v1037_v52 }
  0x59   :  { %926 = vmatprep.subr.bf16.mxu0 %v1038_v53  ;;  %948 = vmatprep.subr.bf16.mxu1 %v1039_v54  ;;  %v908_v54 = vld [vmem:[%s1237_s4] ss:$0 sm:$0xff] }
  0x5c   :  { %927 = vmatpush3.bf16.msra.mxu0 %v1040_v55  ;;  %949 = vmatpush3.bf16.msra.mxu1 %v1041_v56 }
  0x5d   :  { %928 = vmatprep.subr.bf16.mxu0 %v1042_v57  ;;  %950 = vmatprep.subr.bf16.mxu1 %v1043_v58 }
  0x60   :  { %929 = vmatpush3.bf16.msra.mxu0 %v1044_v59  ;;  %951 = vmatpush3.bf16.msra.mxu1 %v1045_v60 }
  0x61   :  { %930 = vmatprep.subr.bf16.mxu0 %v1046_v61  ;;  %952 = vmatprep.subr.bf16.mxu1 %v1047_v62 }
  0x64   :  { %931 = vmatpush3.bf16.msra.mxu0 %v1048_v63  ;;  %953 = vmatpush3.bf16.msra.mxu1 %v1049_v0 }
  0x65   :  { %932 = vmatprep.subr.bf16.mxu0 %v1050_v1  ;;  %954 = vmatprep.subr.bf16.mxu1 %v1051_v2 }
  0x68   :  { %933 = vmatpush3.bf16.msra.mxu0 %v1052_v3  ;;  %955 = vmatpush3.bf16.msra.mxu1 %v1053_v4 }
 0x10b   :  { %v341_v12 = vpop.f32.mrf.mxu0  ;;  %v384_v13 = vpop.f32.mrf.mxu1 }
 0x10c   :  { %v342_v26 = vadd.f32 %v341_v12, %v124_v16  ;;  %v385_v29 = vadd.f32 %v384_v13, %v132_v17 }
 0x10d   :  { %v343_v18 = vpop.f32.mrf.mxu0  ;;  %v386_v19 = vpop.f32.mrf.mxu1 }
 0x10e   :  { %v344_v22 = vadd.f32 %v343_v18, %v128_v14  ;;  %v387_v23 = vadd.f32 %v386_v19, %v136_v15  ;;  %v393_v40 = vmax.f32 %v342_v26, 0.0  ;;  %v395_v41 = vmax.f32 %v385_v29, 0.0  ;;  %v910_v19 = vld [vmem:[%s1239_s6] ss:$0 sm:$0xff] }
 0x10f   :  { %v345_v20 = vpop.f32.mrf.mxu0  ;;  %v388_v21 = vpop.f32.mrf.mxu1 }
 0x110   :  { %v346_v24 = vadd.f32 %v345_v20, %v124_v16  ;;  %v389_v25 = vadd.f32 %v388_v21, %v132_v17  ;;  %v394_v36 = vmax.f32 %v344_v22, 0.0  ;;  %v396_v37 = vmax.f32 %v387_v23, 0.0  ;;  %v909_v17 = vld [vmem:[%s1238_s5] ss:$0 sm:$0xff] }
 0x111   :  { %v347_v30 = vpop.f32.mrf.mxu0  ;;  %v390_v31 = vpop.f32.mrf.mxu1 }
 0x112   :  { %v348_v32 = vadd.f32 %v347_v30, %v128_v14  ;;  %v391_v33 = vadd.f32 %v390_v31, %v136_v15  ;;  %v397_v34 = vmax.f32 %v346_v24, 0.0  ;;  %v399_v35 = vmax.f32 %v389_v25, 0.0 }
 0x114   :  { %v398_v38 = vmax.f32 %v348_v32, 0.0  ;;  %v400_v39 = vmax.f32 %v391_v33, 0.0  ;;  %v401_v44 = vpack.c.bf16 %v397_v34, %v393_v40  ;;  %v403_v45 = vpack.c.bf16 %v399_v35, %v395_v41 }
 0x116   :  { %v402_v42 = vpack.c.bf16 %v398_v38, %v394_v36  ;;  %v404_v43 = vpack.c.bf16 %v400_v39, %v396_v37 }
 0x118   :  { %693 = vmatprep.mubr.bf16.mxu0 %v402_v42  ;;  %734 = vmatprep.mubr.bf16.mxu1 %v404_v43 }
 0x119   :  { %694 = vmatmul.mubr.bf16.vlgmr.msra.gmra.mxu0 %v401_v44  ;;  %735 = vmatmul.mubr.bf16.vlgmr.msra.gmra.mxu1 %v403_v45 }
 0x1d9   :  { %v934_v46 = vpop.f32.mrf.mxu0  ;;  %v956_v47 = vpop.f32.mrf.mxu1 }
 0x1db   :  { %v935_v48 = vpop.f32.mrf.mxu0  ;;  %v957_v49 = vpop.f32.mrf.mxu1 }
 0x1dc   :  { %v936_v50 = vadd.f32 %v935_v48, %v934_v46  ;;  %v958_v51 = vadd.f32 %v957_v49, %v956_v47 }
 0x1dd   :  { %v937_v52 = vpop.f32.mrf.mxu0  ;;  %v959_v53 = vpop.f32.mrf.mxu1 }
 0x1de   :  { %v737_v55 = vadd.f32 %v958_v51, %v936_v50 }
 0x1df   :  { %v938_v56 = vpop.f32.mrf.mxu0  ;;  %v960_v57 = vpop.f32.mrf.mxu1 }
 0x1e0   :  { %v939_v58 = vadd.f32 %v938_v56, %v937_v52  ;;  %v961_v59 = vadd.f32 %v960_v57, %v959_v53  ;;  %v770_v60 = vadd.f32 %v908_v54, %v737_v55 }
 0x1e2   :  { %v740_v61 = vadd.f32 %v961_v59, %v939_v58  ;;  %v774_v62 = vadd.f32 %v770_v60, %v1207_v27 }
 0x1e4   :  { %776 = vadd.xlane.f32.xlu0 %v774_v62  ;;  %v783_v63 = vmul.f32 %v774_v62, %v774_v62  ;;  %v771_v0 = vadd.f32 %v908_v54, %v740_v61 }
 0x1e6   :  { %785 = vadd.xlane.f32.xlu1 %v783_v63  ;;  %v775_v1 = vadd.f32 %v771_v0, %v1209_v28 }
 0x1e8   :  { %778 = vadd.xlane.f32.xlu0 %v775_v1  ;;  %v784_v2 = vmul.f32 %v775_v1, %v775_v1 }
 0x1ea   :  { %787 = vadd.xlane.f32.xlu1 %v784_v2 }
 0x26d   :  { %v777_v3 = vpop.xlane.xlu0 %776 }
 0x26e   :  { %v781_v4 = vmul.f32 0.0078125, %v777_v3 }
 0x26f   :  { %v786_v5 = vpop.xlane.xlu1 %785 }
 0x270   :  { %v791_v6 = vmul.f32 %v781_v4, %v781_v4  ;;  %v789_v7 = vmul.f32 0.0078125, %v786_v5  ;;  %v795_v28 = vsub.f32 %v774_v62, %v781_v4 }
 0x271   :  { %v779_v8 = vpop.xlane.xlu0 %778 }
 0x272   :  { %v793_v9 = vsub.f32 %v789_v7, %v791_v6  ;;  %v782_v10 = vmul.f32 0.0078125, %v779_v8 }
 0x273   :  { %v788_v11 = vpop.xlane.xlu1 %787 }
 0x274   :  { %v797_v12 = vadd.f32 1e-05, %v793_v9  ;;  %v792_v27 = vmul.f32 %v782_v10, %v782_v10  ;;  %v790_v13 = vmul.f32 0.0078125, %v788_v11  ;;  %v796_v20 = vsub.f32 %v775_v1, %v782_v10 }
 0x276   :  { %1054 = vrsqrt.f32 %v797_v12  ;;  %v794_v14 = vsub.f32 %v790_v13, %v792_v27 }
 0x278   :  { %v798_v15 = vadd.f32 1e-05, %v794_v14 }
 0x27a   :  { %1056 = vrsqrt.f32 %v798_v15 }
 0x283   :  { %v1055_v16 = vpop.eup %1054 }
 0x284   :  { %v801_v18 = vmul.f32 %v1055_v16, %v795_v28 }
 0x286   :  { %v810_v21 = vmul.f32 %v909_v17, %v801_v18 }
 0x287   :  { %v1057_v22 = vpop.eup %1056 }
 0x288   :  { %v802_v23 = vmul.f32 %v1057_v22, %v796_v20  ;;  %v819_v24 = vadd.f32 %v910_v19, %v810_v21 }
 0x28a   :  { %v811_v25 = vmul.f32 %v909_v17, %v802_v23  ;;  %821 = vst [vmem:[#allocation9] sm:$0xff] %v819_v24 }
 0x28c   :  { %v820_v26 = vadd.f32 %v910_v19, %v811_v25 }
 0x28e   :  { %822 = vst [vmem:[#allocation9 + $0x8] sm:$0xff] %v820_v26 }
 0x28f   :  { %1129 = shalt.err (!%p1126_p5)
}
 0x290   :  { %834 = dma.vmem_to_hbm [thread:$0]  %s829_s26, 256, %s1240_s7, [#allocation5], %s1148_s11, %s1148_s11, %s1149_s12  }
 0x291   :  { %1142 = dma.done.wait [#allocation5], 256  }
 0x292   :  { %1143 = vsyncadd [#allocation5], 4294967040 }
 0x293   :  { %838 = vsyncpa [#allocation4], 1 }
 0x294   :  { %839 = vsyncpa [#allocation7], 1 }
 0x295   :  { %840 = vsyncpa [#allocation5], 1 }

</bundles_post_ra>
